<compile_context>
chip_gen: v6e
topology: v6e:2x2x1
jax: 0.10.0
libtpu: 0.0.40
codegen_flags: <defaults>
</compile_context>

<pallas_src>
import jax
import jax.numpy as jnp
from jax.experimental import pallas as pl
from jax.experimental.pallas import tpu as pltpu

_LANE = 128        # vreg lane width
_SUBLANE = 8       # f32 sublane count
_OUT_PAD = 8       # pad the tiny output dim to 8 (not 128): 16x fewer HBM write bytes
GRIDLESS_MAX_B = 512   # above this, use a batch grid (>=2 steps -> both v7x TCs)


def _round_up(x, m):
    return (x + m - 1) // m * m


# ----------------------------- Pallas kernel ------------------------------ #
def envnet_kernel(s_ref, a_ref, w1_ref, b1_ref, w2_ref, b2_ref, o_ref):
    """Fused concat + Linear + GELU + Linear on one batch tile."""
    s = s_ref[...]                      # (bt, sdim)      f32
    a = a_ref[...]                      # (bt, adim)      f32
    w1 = w1_ref[...]                    # (in_dim, H)     f32
    bt = s.shape[0]
    sdim = s.shape[1]
    adim = a.shape[1]
    hidden = w1.shape[1]

    # ---- Layer 1: h = [s, a] @ w1 + b1 --------------------------------------
    # in_dim = sdim + adim is tiny (4): skip the MXU (K would be padded to
    # 128/256 and <4% of the systolic array would do useful work) and
    # accumulate outer products on the VPU.  This also fuses the torch.cat:
    # s and a are never concatenated anywhere.
    h = jnp.broadcast_to(b1_ref[...], (bt, hidden))
    for k in range(sdim):
        h = h + s[:, k:k + 1] * w1[k:k + 1, :]
    for k in range(adim):
        h = h + a[:, k:k + 1] * w1[sdim + k:sdim + k + 1, :]

    # ---- exact (erf) GELU — matches torch nn.GELU() default; erf -> EUP -----
    inv_sqrt2 = jnp.float32(0.7071067811865476)
    h = 0.5 * h * (1.0 + jax.lax.erf(h * inv_sqrt2))

    # ---- Layer 2: y = h @ w2_pad + b2_pad  (MXU; narrow 8-wide output) ------
    y = jnp.dot(h, w2_ref[...], preferred_element_type=jnp.float32)
    o_ref[...] = (y + b2_ref[...]).astype(o_ref.dtype)


# --------------------------- parameter handling ---------------------------- #
def init_envnet_params(key, sdim=3, adim=1, hidden_width=128):
    """PyTorch nn.Linear-style init: U(-1/sqrt(fan_in), 1/sqrt(fan_in)).
    Weights are stored transposed relative to torch (we compute x @ W)."""
    in_dim = sdim + adim
    k1, k2, k3, k4 = jax.random.split(key, 4)
    lim1 = 1.0 / jnp.sqrt(in_dim)
    lim2 = 1.0 / jnp.sqrt(hidden_width)
    w1 = jax.random.uniform(k1, (in_dim, hidden_width), jnp.float32, -lim1, lim1)
    b1 = jax.random.uniform(k2, (hidden_width,), jnp.float32, -lim1, lim1)
    w2 = jax.random.uniform(k3, (hidden_width, sdim), jnp.float32, -lim2, lim2)
    b2 = jax.random.uniform(k4, (sdim,), jnp.float32, -lim2, lim2)
    return w1, b1, w2, b2


def prepare_envnet_params(params, out_pad=_OUT_PAD):
    """One-time packing of raw params into kernel-ready form.

    w2/b2 are zero-padded on the output axis to `out_pad` (=8) columns.  A
    block whose last dim equals the full array dim is legal, so the kernel
    writes an (tile_b, 8) block: same number of vst instructions as before
    (lane-masked), 16x fewer HBM write bytes than padding to 128.  Do this
    once, outside the step loop.
    """
    w1, b1, w2, b2 = params
    out_dim = w2.shape[1]
    n_pad = (-out_dim) % out_pad
    w1 = w1.astype(jnp.float32)
    b1 = b1.reshape(1, -1).astype(jnp.float32)
    w2p = jnp.pad(w2.astype(jnp.float32), ((0, 0), (0, n_pad)))
    b2p = jnp.pad(b2.reshape(1, -1).astype(jnp.float32), ((0, 0), (0, n_pad)))
    return w1, b1, w2p, b2p


# ------------------------------- wrapper ----------------------------------- #
def envnet_forward(s, a, prepared_params, *, tile_b=2048):
    """s: (B, sdim) f32, a: (B, adim) f32 -> (B, sdim) f32.

    The forward is <10 kFLOPs per row, so wall time is dominated by
    dispatch/DMA latency: batch as many environments / rollout steps as
    possible into B per call to amortize it.  B <= 512 runs gridless (whole
    arrays resident in VMEM); larger B uses a batch-tiled "parallel" grid
    with >=2 steps so v7x's two TensorCores can split the work.
    """
    w1, b1, w2p, b2p = prepared_params
    B, sdim = s.shape
    adim = a.shape[1]
    in_dim, hidden = w1.shape
    n_out = w2p.shape[1]
    out_dim = sdim                      # EnvNet: out_dim == sdim

    # Validate / round the user-tunable tile to a sublane multiple (8) so the
    # (8,128) block constraint can never trip at lowering.
    tile_b = max(_SUBLANE, _round_up(int(tile_b), _SUBLANE))

    use_grid = B > GRIDLESS_MAX_B
    if use_grid:
        # At most tile_b rows per step, but always >= 2 grid steps so the
        # "parallel" axis can be sharded across both v7x TensorCores.
        eff_tile = min(tile_b, _round_up(pl.cdiv(B, 2), _SUBLANE))
        Bp = _round_up(B, eff_tile)
    else:
        eff_tile = None
        Bp = _round_up(B, _SUBLANE)

    if Bp != B:                         # keep tiles (8,128)-aligned
        s = jnp.pad(s, ((0, Bp - B), (0, 0)))
        a = jnp.pad(a, ((0, Bp - B), (0, 0)))

    cost = pl.CostEstimate(
        flops=2 * Bp * hidden * (in_dim + n_out),
        transcendentals=Bp * hidden,
        bytes_accessed=4 * (Bp * in_dim + in_dim * hidden + hidden
                            + hidden * n_out + n_out + Bp * n_out),
    )
    out_shape = jax.ShapeDtypeStruct((Bp, n_out), jnp.float32)

    if not use_grid:
        vmem = lambda: pl.BlockSpec(memory_space=pltpu.MemorySpace.VMEM)
        out_p = pl.pallas_call(
            envnet_kernel,
            out_shape=out_shape,
            in_specs=[vmem() for _ in range(6)],
            out_specs=vmem(),
            cost_estimate=cost,
        )(s, a, w1, b1, w2p, b2p)
    else:
        # Per-step VMEM footprint estimate (double-buffered tiles + resident
        # weights + the h temporary).  Only set an explicit limit when a very
        # large tile would exceed v5e's 16 MiB scoped default.
        vmem_bytes = 4 * (2 * eff_tile * (sdim + adim)        # input buffers
                          + 2 * eff_tile * n_out              # output buffers
                          + in_dim * hidden + hidden          # w1, b1
                          + hidden * n_out + n_out            # w2, b2
                          + eff_tile * hidden)                # h temporary
        cp_kwargs = dict(dimension_semantics=("parallel",))
        if vmem_bytes > 12 * 1024 * 1024:
            cp_kwargs["vmem_limit_bytes"] = int(vmem_bytes) + 4 * 1024 * 1024

        out_p = pl.pallas_call(
            envnet_kernel,
            out_shape=out_shape,
            grid=(Bp // eff_tile,),
            in_specs=[
                pl.BlockSpec((eff_tile, sdim), lambda i: (i, 0)),
                pl.BlockSpec((eff_tile, adim), lambda i: (i, 0)),
                # weights/biases: same block every step -> stay VMEM-resident
                pl.BlockSpec((in_dim, hidden), lambda i: (0, 0)),
                pl.BlockSpec((1, hidden), lambda i: (0, 0)),
                pl.BlockSpec((hidden, n_out), lambda i: (0, 0)),
                pl.BlockSpec((1, n_out), lambda i: (0, 0)),
            ],
            out_specs=pl.BlockSpec((eff_tile, n_out), lambda i: (i, 0)),
            compiler_params=pltpu.CompilerParams(**cp_kwargs),
            cost_estimate=cost,
        )(s, a, w1, b1, w2p, b2p)

    # With the 8-wide padded output this slice copies 16x less data than the
    # old 128-wide version; downstream code may also consume out_p directly.
    return out_p[:B, :out_dim]


# ------------------------------ reference ---------------------------------- #
def envnet_reference(s, a, params):
    """Plain-JAX reference matching the PyTorch module.

    Layer 1 uses HIGHEST precision (the kernel computes it exactly on the
    VPU); layer 2 uses the default MXU matmul precision, same as the in-kernel
    jnp.dot, so the check isolates kernel wiring rather than MXU pass counts.
    """
    w1, b1, w2, b2 = params
    x = jnp.concatenate([s, a], axis=-1)
    h = jnp.dot(x, w1, precision=jax.lax.Precision.HIGHEST) + b1
    h = 0.5 * h * (1.0 + jax.lax.erf(h / jnp.sqrt(2.0)))
    return jnp.dot(h, w2) + b2


if __name__ == "__main__":
    key = jax.random.PRNGKey(0)
    k_params, k_s0, k_a0, k_s1, k_a1 = jax.random.split(key, 5)

    sdim, adim, hidden = 3, 1, 128

    raw_params = init_envnet_params(k_params, sdim=sdim, adim=adim,
                                    hidden_width=hidden)
    kernel_params = prepare_envnet_params(raw_params)   # one-time padding

    fwd = jax.jit(envnet_forward, static_argnames=("tile_b",))

    # 1) small per-step batch (gridless path, whole arrays resident in VMEM)
    B0 = 8
    s0 = jax.random.normal(k_s0, (B0, sdim), jnp.float32)
    a0 = jax.random.normal(k_a0, (B0, adim), jnp.float32)
    out0 = jax.block_until_ready(fwd(s0, a0, kernel_params))
    ref0 = jax.block_until_ready(envnet_reference(s0, a0, raw_params))
    assert out0.shape == (B0, sdim), out0.shape
    # tolerance leaves headroom for MXU bf16-pass rounding of the layer-2 dot
    assert jnp.allclose(out0, ref0, atol=5e-4, rtol=5e-4)

    # 2) larger batch (exercises the "parallel" batch grid with >=2 steps, the
    #    batch-padding path, and the 8-wide padded output)
    B1 = 523
    s1 = jax.random.normal(k_s1, (B1, sdim), jnp.float32)
    a1 = jax.random.normal(k_a1, (B1, adim), jnp.float32)
    out1 = jax.block_until_ready(fwd(s1, a1, kernel_params))
    ref1 = jax.block_until_ready(envnet_reference(s1, a1, raw_params))
    assert out1.shape == (B1, sdim), out1.shape
    assert jnp.allclose(out1, ref1, atol=5e-4, rtol=5e-4)

    print("KERNEL_OK")
</pallas_src>

<mosaic_0001>
module attributes {stable_mosaic.version = 11 : i64} {
  func.func @envnet_kernel(%arg0: memref<8x3xf32, #tpu.memory_space<vmem>>, %arg1: memref<8x1xf32, #tpu.memory_space<vmem>>, %arg2: memref<4x128xf32, #tpu.memory_space<vmem>>, %arg3: memref<1x128xf32, #tpu.memory_space<vmem>>, %arg4: memref<128x8xf32, #tpu.memory_space<vmem>>, %arg5: memref<1x8xf32, #tpu.memory_space<vmem>>, %arg6: memref<8x8xf32, #tpu.memory_space<vmem>>) attributes {dimension_semantics = [], scalar_prefetch = 0 : i64, scratch_operands = 0 : i64, tpu.core_type = #tpu.core_type<tc>} {
    %c0 = arith.constant 0 : index
    %c0_0 = arith.constant 0 : index
    %0 = vector.load %arg0[%c0, %c0_0] : memref<8x3xf32, #tpu.memory_space<vmem>>, vector<8x3xf32>
    %c0_1 = arith.constant 0 : index
    %c0_2 = arith.constant 0 : index
    %1 = vector.load %arg1[%c0_1, %c0_2] : memref<8x1xf32, #tpu.memory_space<vmem>>, vector<8x1xf32>
    %c0_3 = arith.constant 0 : index
    %c0_4 = arith.constant 0 : index
    %2 = vector.load %arg2[%c0_3, %c0_4] : memref<4x128xf32, #tpu.memory_space<vmem>>, vector<4x128xf32>
    %c0_5 = arith.constant 0 : index
    %c0_6 = arith.constant 0 : index
    %3 = vector.load %arg3[%c0_5, %c0_6] : memref<1x128xf32, #tpu.memory_space<vmem>>, vector<1x128xf32>
    %4 = vector.shape_cast %3 : vector<1x128xf32> to vector<1x128xf32>
    %5 = vector.broadcast %4 : vector<1x128xf32> to vector<8x128xf32>
    %6 = vector.extract_strided_slice %0 {offsets = [0, 0], sizes = [8, 1], strides = [1, 1]} : vector<8x3xf32> to vector<8x1xf32>
    %7 = vector.extract_strided_slice %2 {offsets = [0, 0], sizes = [1, 128], strides = [1, 1]} : vector<4x128xf32> to vector<1x128xf32>
    %8 = vector.broadcast %6 : vector<8x1xf32> to vector<8x128xf32>
    %9 = vector.broadcast %7 : vector<1x128xf32> to vector<8x128xf32>
    %10 = arith.mulf %8, %9 : vector<8x128xf32>
    %11 = arith.addf %5, %10 : vector<8x128xf32>
    %12 = vector.extract_strided_slice %0 {offsets = [0, 1], sizes = [8, 1], strides = [1, 1]} : vector<8x3xf32> to vector<8x1xf32>
    %13 = vector.extract_strided_slice %2 {offsets = [1, 0], sizes = [1, 128], strides = [1, 1]} : vector<4x128xf32> to vector<1x128xf32>
    %14 = vector.broadcast %12 : vector<8x1xf32> to vector<8x128xf32>
    %15 = vector.broadcast %13 : vector<1x128xf32> to vector<8x128xf32>
    %16 = arith.mulf %14, %15 : vector<8x128xf32>
    %17 = arith.addf %11, %16 : vector<8x128xf32>
    %18 = vector.extract_strided_slice %0 {offsets = [0, 2], sizes = [8, 1], strides = [1, 1]} : vector<8x3xf32> to vector<8x1xf32>
    %19 = vector.extract_strided_slice %2 {offsets = [2, 0], sizes = [1, 128], strides = [1, 1]} : vector<4x128xf32> to vector<1x128xf32>
    %20 = vector.broadcast %18 : vector<8x1xf32> to vector<8x128xf32>
    %21 = vector.broadcast %19 : vector<1x128xf32> to vector<8x128xf32>
    %22 = arith.mulf %20, %21 : vector<8x128xf32>
    %23 = arith.addf %17, %22 : vector<8x128xf32>
    %24 = vector.extract_strided_slice %2 {offsets = [3, 0], sizes = [1, 128], strides = [1, 1]} : vector<4x128xf32> to vector<1x128xf32>
    %25 = vector.broadcast %1 : vector<8x1xf32> to vector<8x128xf32>
    %26 = vector.broadcast %24 : vector<1x128xf32> to vector<8x128xf32>
    %27 = arith.mulf %25, %26 : vector<8x128xf32>
    %28 = arith.addf %23, %27 : vector<8x128xf32>
    %cst = arith.constant 5.000000e-01 : f32
    %29 = vector.broadcast %cst : f32 to vector<8x128xf32>
    %30 = arith.mulf %29, %28 : vector<8x128xf32>
    %cst_7 = arith.constant 0.707106769 : f32
    %31 = vector.broadcast %cst_7 : f32 to vector<8x128xf32>
    %32 = arith.mulf %28, %31 : vector<8x128xf32>
    %33 = math.erf %32 : vector<8x128xf32>
    %cst_8 = arith.constant 1.000000e+00 : f32
    %34 = vector.broadcast %cst_8 : f32 to vector<8x128xf32>
    %35 = arith.addf %34, %33 : vector<8x128xf32>
    %36 = arith.mulf %30, %35 : vector<8x128xf32>
    %c0_9 = arith.constant 0 : index
    %c0_10 = arith.constant 0 : index
    %37 = vector.load %arg4[%c0_9, %c0_10] : memref<128x8xf32, #tpu.memory_space<vmem>>, vector<128x8xf32>
    %cst_11 = arith.constant dense<0.000000e+00> : vector<8x8xf32>
    %38 = tpu.matmul %36, %37, %cst_11 {dimension_numbers = #tpu.dot_dimension_numbers<[1], [0], [0], [1], [0, 0, 1, 1], [], []>} : vector<8x128xf32>, vector<128x8xf32>, vector<8x8xf32> -> vector<8x8xf32>
    %c0_12 = arith.constant 0 : index
    %c0_13 = arith.constant 0 : index
    %39 = vector.load %arg5[%c0_12, %c0_13] : memref<1x8xf32, #tpu.memory_space<vmem>>, vector<1x8xf32>
    %40 = vector.broadcast %39 : vector<1x8xf32> to vector<8x8xf32>
    %41 = arith.addf %38, %40 : vector<8x8xf32>
    %c0_14 = arith.constant 0 : index
    %c0_15 = arith.constant 0 : index
    %42 = vector.load %arg6[%c0_14, %c0_15] : memref<8x8xf32, #tpu.memory_space<vmem>>, vector<8x8xf32>
    tpu.vector_store %arg6[%c0_14, %c0_15], %41 {strides = array<i32>} : memref<8x8xf32, #tpu.memory_space<vmem>>, vector<8x8xf32>,
    return
  }
}

</mosaic_0001>

<bundles_post_ra>
// kernel: envnet_forward.1
= control target key start
LH: loop header
LB: loop body
LE: loop exit
PB: predicated region body
PF: predicated region fallthrough
CT: control target
= control target key end

     0   :  { %v245_v0 = vmov 0   ;;  %v246_v2 = vmov 2   ;;  %v247_v4 = vmov 0.0   ;;  %v248_v7 = vmov 1   ;;  %s351_s0 = inlined_call_operand.vmem [shape: f32[8,3], index: 0, kind: input, shape index: {}]   ;;  %s352_s4 = inlined_call_operand.vmem [shape: f32[128,8], index: 4, kind: input, shape index: {}]   ;;  %s353_s1 = inlined_call_operand.vmem [shape: f32[8,1], index: 1, kind: input, shape index: {}]   ;;  %s354_s2 = inlined_call_operand.vmem [shape: f32[4,128], index: 2, kind: input, shape index: {}]   ;;  %s355_s3 = inlined_call_operand.vmem [shape: f32[1,128], index: 3, kind: input, shape index: {}]   ;;  %s356_s5 = inlined_call_operand.vmem [shape: f32[1,8], index: 5, kind: input, shape index: {}]   ;;  %s357_s6 = inlined_call_operand.vmem [shape: f32[8,8], index: 6, kind: output, shape index: {}]  }
   0x1   :  { %238 = vset.pattern.permute.xlu0 %v245_v0  ;;  %v23_v1 = vld [vmem:[%s351_s0] sm:$0xff]  ;;  %240 = vset.pattern.permute.xlu1 %v246_v2  ;;  %v95_v3 = vld [vmem:[%s352_s4 + $0x78] sm:$0xff]  ;;  %v94_v6 = vld [vmem:[%s352_s4 + $0x70] sm:$0xff]  ;;  %vm249_vm0 = vmmov 0   ;;  %v38_v22 = vlaneseq  ;;  %vm173_vm1 = vcmask 64512  }
   0x2   :  { %35 = vperm.xlu0 %238, %v23_v1   ;;  %55 = vperm.xlu1 %240, %v23_v1   ;;  %v24_v5 = vld [vmem:[%s353_s1] sm:$0xff]  ;;  %v93_v8 = vld [vmem:[%s352_s4 + $0x68] sm:$0xff]  ;;  %v91_v10 = vld [vmem:[%s352_s4 + $0x58] sm:$0xff] }
   0x3   :  { %198 = vmatprep.subr.mxu0 %v247_v4  ;;  %v92_v9 = vld [vmem:[%s352_s4 + $0x60] sm:$0xff]  ;;  %v90_v11 = vld [vmem:[%s352_s4 + $0x50] sm:$0xff]  ;;  %230 = vmatprep.mubr.msk.f32.mxu0 %vm249_vm0, %v247_v4  ;;  %v89_v12 = vld [vmem:[%s352_s4 + $0x48] sm:$0xff]  ;;  %v39_v23 = vshrl.u32 %v38_v22, 7 }
   0x4   :  { %199 = vmatpush3.msra.mxu0 %v95_v3  ;;  %v88_v13 = vld [vmem:[%s352_s4 + $0x40] sm:$0xff]  ;;  %v87_v14 = vld [vmem:[%s352_s4 + $0x38] sm:$0xff]  ;;  %v86_v15 = vld [vmem:[%s352_s4 + $0x30] sm:$0xff] }
   0x5   :  { %200 = vmatprep.subr.mxu0 %v247_v4  ;;  %v85_v16 = vld [vmem:[%s352_s4 + $0x28] sm:$0xff]  ;;  %v84_v17 = vld [vmem:[%s352_s4 + $0x20] sm:$0xff]  ;;  %v83_v18 = vld [vmem:[%s352_s4 + $0x18] sm:$0xff]  ;;  %v40_v24 = vsub.s32 0, %v39_v23  ;;  %v50_v27 = vsub.s32 1, %v39_v23  ;;  %v60_v29 = vsub.s32 2, %v39_v23 }
   0x6   :  { %239 = vset.pattern.permute.xlu0 %v248_v7  ;;  %241 = vset.pattern.permute.xlu1 %v245_v0  ;;  %v82_v19 = vld [vmem:[%s352_s4 + $0x10] sm:$0xff]  ;;  %v81_v20 = vld [vmem:[%s352_s4 + $0x8] sm:$0xff]  ;;  %v80_v21 = vld [vmem:[%s352_s4] sm:$0xff]  ;;  %v71_v31 = vsub.s32 3, %v39_v23 }
   0x7   :  { %45 = vperm.xlu0 %239, %v23_v1   ;;  %66 = vperm.xlu1 %241, %v24_v5   ;;  %v25_v25 = vld [vmem:[%s354_s2] sm:$0xf] }
   0x8   :  { %201 = vmatpush3.msra.mxu0 %v94_v6  ;;  %v41_v26 = vrot.slane %v25_v25, %v40_v24  ;;  %v51_v33 = vrot.slane %v25_v25, %v50_v27  ;;  %v179_v34 = vld [vmem:[%s355_s3] ss:$0 sm:$0xff]  ;;  %v61_v35 = vrot.slane %v25_v25, %v60_v29  ;;  %v72_v36 = vrot.slane %v25_v25, %v71_v31 }
   0x9   :  { %202 = vmatprep.subr.mxu0 %v247_v4  ;;  %v180_v51 = vld [vmem:[%s356_s5] ss:$0 sm:$0xff] }
   0xa   :  { %203 = vmatpush3.msra.mxu0 %v93_v8 }
   0xb   :  { %204 = vmatprep.subr.mxu0 %v247_v4  ;;  %242 = vset.pattern.permute.xlu0 %v245_v0 }
   0xc   :  { %205 = vmatpush3.msra.mxu0 %v92_v9 }
   0xd   :  { %206 = vmatprep.subr.mxu0 %v247_v4 }
   0xe   :  { %207 = vmatpush3.msra.mxu0 %v91_v10 }
   0xf   :  { %208 = vmatprep.subr.mxu0 %v247_v4 }
  0x10   :  { %209 = vmatpush3.msra.mxu0 %v90_v11 }
  0x11   :  { %210 = vmatprep.subr.mxu0 %v247_v4 }
  0x12   :  { %211 = vmatpush3.msra.mxu0 %v89_v12 }
  0x13   :  { %212 = vmatprep.subr.mxu0 %v247_v4 }
  0x14   :  { %213 = vmatpush3.msra.mxu0 %v88_v13 }
  0x15   :  { %214 = vmatprep.subr.mxu0 %v247_v4 }
  0x16   :  { %215 = vmatpush3.msra.mxu0 %v87_v14 }
  0x17   :  { %216 = vmatprep.subr.mxu0 %v247_v4 }
  0x18   :  { %217 = vmatpush3.msra.mxu0 %v86_v15 }
  0x19   :  { %218 = vmatprep.subr.mxu0 %v247_v4 }
  0x1a   :  { %219 = vmatpush3.msra.mxu0 %v85_v16 }
  0x1b   :  { %220 = vmatprep.subr.mxu0 %v247_v4 }
  0x1c   :  { %221 = vmatpush3.msra.mxu0 %v84_v17 }
  0x1d   :  { %222 = vmatprep.subr.mxu0 %v247_v4 }
  0x1e   :  { %223 = vmatpush3.msra.mxu0 %v83_v18 }
  0x1f   :  { %224 = vmatprep.subr.mxu0 %v247_v4 }
  0x20   :  { %225 = vmatpush3.msra.mxu0 %v82_v19 }
  0x21   :  { %226 = vmatprep.subr.mxu0 %v247_v4 }
  0x22   :  { %227 = vmatpush3.msra.mxu0 %v81_v20 }
  0x23   :  { %228 = vmatprep.subr.mxu0 %v247_v4 }
  0x24   :  { %229 = vmatpush3.msra.mxu0 %v80_v21 }
  0x7d   :  { %v36_v28 = vpop.permute.xlu0 %35  ;;  %v56_v30 = vpop.permute.xlu1 %55 }
  0x7e   :  { %v42_v32 = vmul.f32 %v41_v26, %v36_v28  ;;  %v62_v41 = vmul.f32 %v61_v35, %v56_v30 }
  0x80   :  { %v43_v39 = vadd.f32 %v179_v34, %v42_v32 }
  0x82   :  { %v46_v37 = vpop.permute.xlu0 %45  ;;  %v67_v38 = vpop.permute.xlu1 %66 }
  0x83   :  { %v52_v40 = vmul.f32 %v51_v33, %v46_v37  ;;  %v73_v43 = vmul.f32 %v72_v36, %v67_v38 }
  0x85   :  { %v53_v42 = vadd.f32 %v52_v40, %v43_v39 }
  0x87   :  { %v63_v44 = vadd.f32 %v62_v41, %v53_v42 }
  0x89   :  { %v74_v45 = vadd.f32 %v73_v43, %v63_v44 }
  0x8b   :  { %v76_v46 = vmul.f32 0.70710677, %v74_v45  ;;  %v75_v48 = vmul.f32 0.5, %v74_v45 }
  0x8d   :  { %243 = verf.f32 %v76_v46 }
  0x9a   :  { %v244_v47 = vpop.eup %243 }
  0x9b   :  { %v78_v49 = vadd.f32 1.0, %v244_v47 }
  0x9d   :  { %v79_v50 = vmul.f32 %v78_v49, %v75_v48 }
  0x9f   :  { %231 = vmatmul.mubr.f32.vlgmr.msra.gmra.mxu0 %v79_v50 }
 0x15f   :  { %v169_v52 = vpop.f32.mrf.mxu0 }
 0x160   :  { %v170_v53 = vadd.f32 %v180_v51, %v169_v52 }
 0x161   :  { %v232_v54 = vpop.f32.mrf.mxu0 }
 0x162   :  { %174 = vst.msk [vmem:[%s357_s6] sm:$0xff] %vm173_vm1, %v170_v53 }

</bundles_post_ra>
